<compile_context>
chip_gen: v7x
topology: tpu7x:2x2x1
jax: 0.10.0
libtpu: 0.0.40
codegen_flags: <defaults>
</compile_context>

<pallas_src>
import numpy as np
import jax
import jax.numpy as jnp
from jax.experimental import pallas as pl
from jax.experimental.pallas import tpu as pltpu

C_PAD = 128        # class dim padded to one full lane width (lane-dense MXU out)
MAX_TILE_N = 4096  # upper bound on rows per grid step (multiple of 128)


def _round_up(v, m):
    return ((v + m - 1) // m) * m


def _choose_tile_n(n_rows, d):
    """Adaptive row-tile size.

    * large (up to 4096) to amortize the ~0.35us per-grid-step overhead,
    * capped so the (TILE_N, D) f32 input block stays ~<=4 MiB (Pallas
      double-buffers it; labels block adds ~0.5 KiB/row of VMEM on top),
    * when the whole problem would fit in one tile, split into two so the
      "parallel" row axis can shard across both v7x TensorCores.
    """
    n128 = _round_up(max(n_rows, 1), 128)
    tile = min(MAX_TILE_N, n128)
    vmem_cap = max(128, ((4 << 20) // (4 * d)) // 128 * 128)
    tile = min(tile, vmem_cap)
    if n128 > 128 and n128 <= tile:
        tile = max(128, _round_up((n128 + 1) // 2, 128))
    return tile


def _dense_ce_kernel(x_ref, w1_ref, b1_ref, w2_ref, b2_ref, labels_ref,
                     preds_ref, partial_ref):
    # ---- Dense: Linear -> ReLU -> Linear ----
    # bf16 cast happens here (not in the wrapper) so x is read from HBM once
    # at 4 B/elem; MXU accumulates in f32; elementwise/CE math stays f32.
    xb = x_ref[...].astype(jnp.bfloat16)
    h = jnp.dot(xb, w1_ref[...], preferred_element_type=jnp.float32)
    h = jnp.maximum(h + b1_ref[...], 0.0)                          # (TN, H) f32
    logits = jnp.dot(h.astype(jnp.bfloat16), w2_ref[...],
                     preferred_element_type=jnp.float32) + b2_ref[...]  # (TN, 128)
    # Padded class columns carry a -1e9 bias -> never win the max, exp() -> 0.

    # Narrow (TN, C) bf16 store (halves masked-store ops + writeback vs f32).
    preds_ref[...] = logits[:, :preds_ref.shape[-1]].astype(preds_ref.dtype)

    # ---- fused CrossEntropy (ignore_index = -1), per-tile partial sums ----
    labels = labels_ref[...]                                        # (TN, 1) int32
    m = jnp.max(logits, axis=-1, keepdims=True)                     # (TN, 1)
    lse = jnp.log(jnp.sum(jnp.exp(logits - m), axis=-1, keepdims=True)) + m
    lane = jax.lax.broadcasted_iota(jnp.int32, logits.shape, 1)     # (TN, 128)
    # labels are in [0, C) -> only real class columns can match. (Out-of-range
    # labels in [C,128) would pick a -1e9 padded column: validate upstream.)
    picked = jnp.sum(jnp.where(lane == labels, logits, 0.0),
                     axis=-1, keepdims=True)                        # (TN, 1)
    # Ragged-tail rows carry label -1 (set in the wrapper) -> excluded here.
    valid = labels != -1                                            # (TN, 1) bool
    tile_sum = jnp.sum(jnp.where(valid, lse - picked, 0.0))         # scalar
    tile_cnt = jnp.sum(valid.astype(jnp.float32))                   # scalar

    # (8, 128) lane-dense partial block; lane 0 = loss sum, lane 1 = count.
    # (Scalar element-stores into VMEM refs are avoided for lowering safety;
    #  this fill is ~3 vreg VALU ops per tile, i.e. noise.)
    out_lane = jax.lax.broadcasted_iota(jnp.int32, partial_ref.shape, 1)
    partial_ref[...] = jnp.where(out_lane == 0, tile_sum,
                                 jnp.where(out_lane == 1, tile_cnt, 0.0))


def _dense_only_kernel(x_ref, w1_ref, b1_ref, w2_ref, b2_ref, preds_ref):
    # Inference-style path (labels is None): no CE epilogue at all.
    xb = x_ref[...].astype(jnp.bfloat16)
    h = jnp.dot(xb, w1_ref[...], preferred_element_type=jnp.float32)
    h = jnp.maximum(h + b1_ref[...], 0.0)
    logits = jnp.dot(h.astype(jnp.bfloat16), w2_ref[...],
                     preferred_element_type=jnp.float32) + b2_ref[...]
    preds_ref[...] = logits[:, :preds_ref.shape[-1]].astype(preds_ref.dtype)


def classification_task_forward(x, labels, params, weight=1.0, label_map=None,
                                preds_dtype=jnp.bfloat16):
    """ClassificationTask.forward for the masks=None / context=None path.

    preds are returned in `preds_dtype` (bf16 by default: MXU operands are
    bf16 anyway and the narrow class-dim store is the store-side bottleneck;
    pass jnp.float32 to trade bandwidth for precision).
    """
    B, S, D = x.shape
    H = params["w1"].shape[1]
    C = params["w2"].shape[1]
    assert C <= C_PAD, "kernel assumes n_classes <= 128"
    N = B * S

    tile_n = _choose_tile_n(N, D)
    n_tiles = -(-N // tile_n)
    N_pad = n_tiles * tile_n

    # x stays f32; pad rows only when ragged w.r.t. the tile (zero rows).
    x2 = x.reshape(N, D)
    if N_pad != N:
        x2 = jnp.pad(x2, ((0, N_pad - N), (0, 0)))

    w1 = params["w1"].astype(jnp.bfloat16)
    b1 = params["b1"].reshape(1, H).astype(jnp.float32)
    w2p = jnp.zeros((H, C_PAD), jnp.bfloat16).at[:, :C].set(
        params["w2"].astype(jnp.bfloat16))
    b2p = jnp.full((1, C_PAD), -1e9, jnp.float32).at[:, :C].set(
        params["b2"].reshape(1, C).astype(jnp.float32))

    x_spec = pl.BlockSpec((tile_n, D), lambda i: (i, 0))      # x rows (tiled)
    w_specs = [
        pl.BlockSpec((D, H), lambda i: (0, 0)),               # weights resident
        pl.BlockSpec((1, H), lambda i: (0, 0)),
        pl.BlockSpec((H, C_PAD), lambda i: (0, 0)),
        pl.BlockSpec((1, C_PAD), lambda i: (0, 0)),
    ]
    preds_spec = pl.BlockSpec((tile_n, C), lambda i: (i, 0))
    preds_shape = jax.ShapeDtypeStruct((N_pad, C), preds_dtype)
    weight_bytes = (D * H + H * C_PAD) * 2 + (H + C_PAD) * 4
    mm_flops = 2 * N_pad * (D * H + H * C_PAD)
    comp = pltpu.CompilerParams(dimension_semantics=("parallel",))

    if labels is None:
        cost = pl.CostEstimate(
            flops=mm_flops, transcendentals=0,
            bytes_accessed=N_pad * D * 4 + weight_bytes + N_pad * C * 2)
        preds_pad = pl.pallas_call(
            _dense_only_kernel,
            grid=(n_tiles,),
            in_specs=[x_spec, *w_specs],
            out_specs=preds_spec,
            out_shape=preds_shape,
            compiler_params=comp,
            cost_estimate=cost,
        )(x2, w1, b1, w2p, b2p)
        preds = preds_pad[:N].reshape(B, S, C)
        return preds, None

    lab = labels.reshape(N).astype(jnp.int32)
    if label_map:
        # single LUT gather instead of K sequential jnp.where passes
        max_k = max(label_map.keys())
        lut = np.arange(max_k + 1, dtype=np.int32)
        for k, v in label_map.items():
            lut[k] = v
        lab = jnp.where(lab >= 0, jnp.asarray(lut)[jnp.clip(lab, 0, max_k)], lab)
    # Padded tail rows get label -1 so they are ignored by the loss.
    lab_pad = lab if N_pad == N else jnp.pad(lab, (0, N_pad - N),
                                             constant_values=-1)
    lab_pad = lab_pad.reshape(N_pad, 1)

    cost = pl.CostEstimate(
        flops=mm_flops,
        transcendentals=N_pad * C_PAD,
        bytes_accessed=(N_pad * D * 4 + weight_bytes + N_pad * 4
                        + N_pad * C * 2 + n_tiles * 8 * 128 * 4))

    preds_pad, partials = pl.pallas_call(
        _dense_ce_kernel,
        grid=(n_tiles,),
        in_specs=[
            x_spec, *w_specs,
            # labels: (TILE_N,1) int32 pads to 128 VMEM lanes (~0.5 KiB/row);
            # budgeted by the tile-size cap in _choose_tile_n.
            pl.BlockSpec((tile_n, 1), lambda i: (i, 0)),
        ],
        out_specs=[
            preds_spec,                                    # narrow bf16 preds
            pl.BlockSpec((8, 128), lambda i: (i, 0)),      # per-tile [sum, count]
        ],
        out_shape=[
            preds_shape,
            jax.ShapeDtypeStruct((n_tiles * 8, 128), jnp.float32),
        ],
        compiler_params=comp,
        cost_estimate=cost,
    )(x2, w1, b1, w2p, b2p, lab_pad)

    preds = preds_pad[:N].reshape(B, S, C)
    part = partials.reshape(n_tiles, 8, 128)
    loss_sum = jnp.sum(part[:, 0, 0])
    valid_cnt = jnp.sum(part[:, 0, 1])
    # mean over non-ignored rows; NaN when every label is -1 (torch CE "mean").
    loss = (loss_sum / valid_cnt) * weight

    # TODO(synk): masks/input_type_mask path (dynamic per-object-type column
    # selection), context-conditioned Dense and run_inference masked softmax
    # are not implemented here.
    return preds, loss


def _reference_forward(x, labels, params, weight=1.0):
    """Pure-JAX f32 reference of Dense + CE(ignore_index=-1, mean)."""
    B, S, D = x.shape
    C = params["w2"].shape[1]
    h = jnp.maximum(x.reshape(-1, D) @ params["w1"] + params["b1"], 0.0)
    logits = h @ params["w2"] + params["b2"]
    lab = labels.reshape(-1)
    m = jnp.max(logits, axis=-1, keepdims=True)
    lse = jnp.log(jnp.sum(jnp.exp(logits - m), axis=-1, keepdims=True)) + m
    picked = jnp.take_along_axis(logits, jnp.clip(lab, 0, C - 1)[:, None], 1)
    valid = lab != -1
    per = jnp.where(valid, (lse - picked)[:, 0], 0.0)
    loss = jnp.sum(per) / jnp.sum(valid.astype(jnp.float32)) * weight
    return logits.reshape(B, S, C), loss


if __name__ == "__main__":
    key = jax.random.PRNGKey(0)
    B, S, D, H, C = 2, 8, 32, 64, 8   # batch, seq, embed, hidden, n_classes

    kx, kw1, kw2, kl = jax.random.split(key, 4)
    x = jax.random.normal(kx, (B, S, D), dtype=jnp.float32)

    params = {
        "w1": jax.random.normal(kw1, (D, H), dtype=jnp.float32) * 0.1,
        "b1": jnp.zeros((H,), dtype=jnp.float32),
        "w2": jax.random.normal(kw2, (H, C), dtype=jnp.float32) * 0.1,
        "b2": jnp.zeros((C,), dtype=jnp.float32),
    }

    # Labels in [0, C) with a couple of ignore_index=-1 entries.
    labels = jax.random.randint(kl, (B, S), 0, C, dtype=jnp.int32)
    labels = labels.at[0, 0].set(-1).at[1, 3].set(-1)

    preds, loss = classification_task_forward(x, labels, params, weight=1.0)
    preds = jax.block_until_ready(preds)
    loss = jax.block_until_ready(loss)

    # Also exercise the labels-None (inference) kernel variant.
    preds_inf, loss_inf = classification_task_forward(x, None, params)
    preds_inf = jax.block_until_ready(preds_inf)

    assert preds.shape == (B, S, C)
    assert preds_inf.shape == (B, S, C)
    assert loss.shape == () and loss_inf is None
    assert bool(jnp.isfinite(loss))

    # Loose-tolerance check vs the f32 reference (bf16 MXU inputs -> ~1e-2 rel).
    ref_preds, ref_loss = _reference_forward(x, labels, params, weight=1.0)
    assert jnp.allclose(preds.astype(jnp.float32), ref_preds, rtol=5e-2, atol=3e-2)
    assert jnp.allclose(loss, ref_loss, rtol=5e-2, atol=3e-2)

    print("KERNEL_OK")
</pallas_src>

<mosaic_0001>
module attributes {stable_mosaic.version = 11 : i64} {
  func.func @_dense_ce_kernel(%arg0: i32, %arg1: memref<128x32xf32, #tpu.memory_space<vmem>>, %arg2: memref<32x64xbf16, #tpu.memory_space<vmem>>, %arg3: memref<1x64xf32, #tpu.memory_space<vmem>>, %arg4: memref<64x128xbf16, #tpu.memory_space<vmem>>, %arg5: memref<1x128xf32, #tpu.memory_space<vmem>>, %arg6: memref<128x1xi32, #tpu.memory_space<vmem>>, %arg7: memref<128x8xbf16, #tpu.memory_space<vmem>>, %arg8: memref<8x128xf32, #tpu.memory_space<vmem>>) attributes {dimension_semantics = [#tpu.dimension_semantics<parallel>], iteration_bounds = array<i64: 1>, scalar_prefetch = 0 : i64, scratch_operands = 0 : i64, tpu.core_type = #tpu.core_type<tc>, window_params = [{transform_indices = @transform_0, window_bounds = array<i64: 128, 32>}, {pipeline_mode = #tpu.pipeline_mode<synchronous>, transform_indices = @transform_1, window_bounds = array<i64: 32, 64>}, {pipeline_mode = #tpu.pipeline_mode<synchronous>, transform_indices = @transform_2, window_bounds = array<i64: 1, 64>}, {pipeline_mode = #tpu.pipeline_mode<synchronous>, transform_indices = @transform_3, window_bounds = array<i64: 64, 128>}, {pipeline_mode = #tpu.pipeline_mode<synchronous>, transform_indices = @transform_4, window_bounds = array<i64: 1, 128>}, {transform_indices = @transform_5, window_bounds = array<i64: 128, 1>}, {transform_indices = @transform_6, window_bounds = array<i64: 128, 8>}, {transform_indices = @transform_7, window_bounds = array<i64: 8, 128>}]} {
    %c0 = arith.constant 0 : index
    %c0_0 = arith.constant 0 : index
    %0 = vector.load %arg1[%c0, %c0_0] : memref<128x32xf32, #tpu.memory_space<vmem>>, vector<128x32xf32>
    %1 = arith.truncf %0 : vector<128x32xf32> to vector<128x32xbf16>
    %c0_1 = arith.constant 0 : index
    %c0_2 = arith.constant 0 : index
    %2 = vector.load %arg2[%c0_1, %c0_2] : memref<32x64xbf16, #tpu.memory_space<vmem>>, vector<32x64xbf16>
    %cst = arith.constant dense<0.000000e+00> : vector<128x64xf32>
    %3 = tpu.matmul %1, %2, %cst {dimension_numbers = #tpu.dot_dimension_numbers<[1], [0], [0], [1], [0, 0, 1, 1], [], []>} : vector<128x32xbf16>, vector<32x64xbf16>, vector<128x64xf32> -> vector<128x64xf32>
    %c0_3 = arith.constant 0 : index
    %c0_4 = arith.constant 0 : index
    %4 = vector.load %arg3[%c0_3, %c0_4] : memref<1x64xf32, #tpu.memory_space<vmem>>, vector<1x64xf32>
    %5 = vector.broadcast %4 : vector<1x64xf32> to vector<128x64xf32>
    %6 = arith.addf %3, %5 : vector<128x64xf32>
    %cst_5 = arith.constant 0.000000e+00 : f32
    %7 = vector.broadcast %cst_5 : f32 to vector<128x64xf32>
    %8 = arith.maximumf %6, %7 : vector<128x64xf32>
    %9 = arith.truncf %8 : vector<128x64xf32> to vector<128x64xbf16>
    %c0_6 = arith.constant 0 : index
    %c0_7 = arith.constant 0 : index
    %10 = vector.load %arg4[%c0_6, %c0_7] : memref<64x128xbf16, #tpu.memory_space<vmem>>, vector<64x128xbf16>
    %cst_8 = arith.constant dense<0.000000e+00> : vector<128x128xf32>
    %11 = tpu.matmul %9, %10, %cst_8 {dimension_numbers = #tpu.dot_dimension_numbers<[1], [0], [0], [1], [0, 0, 1, 1], [], []>} : vector<128x64xbf16>, vector<64x128xbf16>, vector<128x128xf32> -> vector<128x128xf32>
    %c0_9 = arith.constant 0 : index
    %c0_10 = arith.constant 0 : index
    %12 = vector.load %arg5[%c0_9, %c0_10] : memref<1x128xf32, #tpu.memory_space<vmem>>, vector<1x128xf32>
    %13 = vector.broadcast %12 : vector<1x128xf32> to vector<128x128xf32>
    %14 = arith.addf %11, %13 : vector<128x128xf32>
    %15 = vector.extract_strided_slice %14 {offsets = [0, 0], sizes = [128, 8], strides = [1, 1]} : vector<128x128xf32> to vector<128x8xf32>
    %16 = arith.truncf %15 : vector<128x8xf32> to vector<128x8xbf16>
    %c0_11 = arith.constant 0 : index
    %c0_12 = arith.constant 0 : index
    %17 = vector.load %arg7[%c0_11, %c0_12] : memref<128x8xbf16, #tpu.memory_space<vmem>>, vector<128x8xbf16>
    tpu.vector_store %arg7[%c0_11, %c0_12], %16 {strides = array<i32>} : memref<128x8xbf16, #tpu.memory_space<vmem>>, vector<128x8xbf16>,
    %c0_13 = arith.constant 0 : index
    %c0_14 = arith.constant 0 : index
    %18 = vector.load %arg6[%c0_13, %c0_14] : memref<128x1xi32, #tpu.memory_space<vmem>>, vector<128x1xi32>
    %cst_15 = arith.constant dense<0xFF800000> : vector<128xf32>
    %19 = vector.multi_reduction <maximumf>, %14, %cst_15 [1] : vector<128x128xf32> to vector<128xf32>
    %20 = vector.shape_cast %19 : vector<128xf32> to vector<128x1xf32>
    %21 = vector.broadcast %20 : vector<128x1xf32> to vector<128x128xf32>
    %22 = arith.subf %14, %21 : vector<128x128xf32>
    %23 = math.exp %22 : vector<128x128xf32>
    %cst_16 = arith.constant dense<0.000000e+00> : vector<128xf32>
    %24 = vector.multi_reduction <add>, %23, %cst_16 [1] : vector<128x128xf32> to vector<128xf32>
    %25 = vector.shape_cast %24 : vector<128xf32> to vector<128x1xf32>
    %26 = math.log %25 : vector<128x1xf32>
    %27 = arith.addf %26, %20 : vector<128x1xf32>
    %28 = tpu.iota {dimensions = array<i32: 1>} : vector<128x128xi32>
    %29 = vector.broadcast %18 : vector<128x1xi32> to vector<128x128xi32>
    %30 = arith.cmpi eq, %28, %29 : vector<128x128xi32>
    %cst_17 = arith.constant 0.000000e+00 : f32
    %31 = vector.broadcast %cst_17 : f32 to vector<128x128xf32>
    %32 = arith.select %30, %14, %31 : vector<128x128xi1>, vector<128x128xf32>
    %cst_18 = arith.constant dense<0.000000e+00> : vector<128xf32>
    %33 = vector.multi_reduction <add>, %32, %cst_18 [1] : vector<128x128xf32> to vector<128xf32>
    %34 = vector.shape_cast %33 : vector<128xf32> to vector<128x1xf32>
    %c-1_i32 = arith.constant -1 : i32
    %35 = vector.broadcast %c-1_i32 : i32 to vector<128x1xi32>
    %36 = arith.cmpi ne, %18, %35 : vector<128x1xi32>
    %37 = arith.subf %27, %34 : vector<128x1xf32>
    %cst_19 = arith.constant 0.000000e+00 : f32
    %38 = vector.broadcast %cst_19 : f32 to vector<128x1xf32>
    %39 = arith.select %36, %37, %38 : vector<128x1xi1>, vector<128x1xf32>
    %40 = vector.shape_cast %39 : vector<128x1xf32> to vector<1x128x1xf32>
    %cst_20 = arith.constant dense<0.000000e+00> : vector<1xf32>
    %41 = vector.multi_reduction <add>, %40, %cst_20 [1, 2] : vector<1x128x1xf32> to vector<1xf32>
    %42 = vector.shape_cast %41 : vector<1xf32> to vector<1x1x1xf32>
    %43 = vector.extract %42[0, 0, 0] : f32 from vector<1x1x1xf32>
    %44 = arith.extui %36 : vector<128x1xi1> to vector<128x1xi32>
    %45 = arith.sitofp %44 : vector<128x1xi32> to vector<128x1xf32>
    %46 = vector.shape_cast %45 : vector<128x1xf32> to vector<1x128x1xf32>
    %cst_21 = arith.constant dense<0.000000e+00> : vector<1xf32>
    %47 = vector.multi_reduction <add>, %46, %cst_21 [1, 2] : vector<1x128x1xf32> to vector<1xf32>
    %48 = vector.shape_cast %47 : vector<1xf32> to vector<1x1x1xf32>
    %49 = vector.extract %48[0, 0, 0] : f32 from vector<1x1x1xf32>
    %50 = tpu.iota {dimensions = array<i32: 1>} : vector<8x128xi32>
    %c0_i32 = arith.constant 0 : i32
    %51 = vector.broadcast %c0_i32 : i32 to vector<8x128xi32>
    %52 = arith.cmpi eq, %50, %51 : vector<8x128xi32>
    %c1_i32 = arith.constant 1 : i32
    %53 = vector.broadcast %c1_i32 : i32 to vector<8x128xi32>
    %54 = arith.cmpi eq, %50, %53 : vector<8x128xi32>
    %cst_22 = arith.constant 0.000000e+00 : f32
    %55 = vector.broadcast %49 : f32 to vector<8x128xf32>
    %56 = vector.broadcast %cst_22 : f32 to vector<8x128xf32>
    %57 = arith.select %54, %55, %56 : vector<8x128xi1>, vector<8x128xf32>
    %58 = vector.broadcast %43 : f32 to vector<8x128xf32>
    %59 = arith.select %52, %58, %57 : vector<8x128xi1>, vector<8x128xf32>
    %c0_23 = arith.constant 0 : index
    %c0_24 = arith.constant 0 : index
    %60 = vector.load %arg8[%c0_23, %c0_24] : memref<8x128xf32, #tpu.memory_space<vmem>>, vector<8x128xf32>
    tpu.vector_store %arg8[%c0_23, %c0_24], %59 {strides = array<i32>} : memref<8x128xf32, #tpu.memory_space<vmem>>, vector<8x128xf32>,
    return
  }
  func.func @transform_0(%arg0: i32) -> (i32, i32) {
    %c0_i32 = arith.constant 0 : i32
    %c0_i32_0 = arith.constant 0 : i32
    return %arg0, %c0_i32 : i32, i32
  }
  func.func @transform_1(%arg0: i32) -> (i32, i32) {
    %c0_i32 = arith.constant 0 : i32
    %c0_i32_0 = arith.constant 0 : i32
    %c0_i32_1 = arith.constant 0 : i32
    return %c0_i32, %c0_i32_0 : i32, i32
  }
  func.func @transform_2(%arg0: i32) -> (i32, i32) {
    %c0_i32 = arith.constant 0 : i32
    %c0_i32_0 = arith.constant 0 : i32
    %c0_i32_1 = arith.constant 0 : i32
    return %c0_i32, %c0_i32_0 : i32, i32
  }
  func.func @transform_3(%arg0: i32) -> (i32, i32) {
    %c0_i32 = arith.constant 0 : i32
    %c0_i32_0 = arith.constant 0 : i32
    %c0_i32_1 = arith.constant 0 : i32
    return %c0_i32, %c0_i32_0 : i32, i32
  }
  func.func @transform_4(%arg0: i32) -> (i32, i32) {
    %c0_i32 = arith.constant 0 : i32
    %c0_i32_0 = arith.constant 0 : i32
    %c0_i32_1 = arith.constant 0 : i32
    return %c0_i32, %c0_i32_0 : i32, i32
  }
  func.func @transform_5(%arg0: i32) -> (i32, i32) {
    %c0_i32 = arith.constant 0 : i32
    %c0_i32_0 = arith.constant 0 : i32
    return %arg0, %c0_i32 : i32, i32
  }
  func.func @transform_6(%arg0: i32) -> (i32, i32) {
    %c0_i32 = arith.constant 0 : i32
    %c0_i32_0 = arith.constant 0 : i32
    return %arg0, %c0_i32 : i32, i32
  }
  func.func @transform_7(%arg0: i32) -> (i32, i32) {
    %c0_i32 = arith.constant 0 : i32
    %c0_i32_0 = arith.constant 0 : i32
    return %arg0, %c0_i32 : i32, i32
  }
}

</mosaic_0001>

<bundles_post_ra>
// kernel: tpu_custom_call.1
= control target key start
LH: loop header
LB: loop body
LE: loop exit
PB: predicated region body
PF: predicated region fallthrough
CT: control target
= control target key end

     0   :  { %vm74_vm0 = vcmask 261120   ;;  %s1854_s0 = inlined_call_operand.vmem [shape: f32[128,32], index: 0, kind: input, shape index: {}]   ;;  %s1855_s1 = inlined_call_operand.vmem [shape: bf16[32,64], index: 1, kind: input, shape index: {}]   ;;  %s1856_s2 = inlined_call_operand.vmem [shape: f32[1,64], index: 2, kind: input, shape index: {}]   ;;  %s1857_s3 = inlined_call_operand.vmem [shape: bf16[64,128], index: 3, kind: input, shape index: {}]   ;;  %s1858_s4 = inlined_call_operand.vmem [shape: f32[1,128], index: 4, kind: input, shape index: {}]   ;;  %s1859_s5 = inlined_call_operand.vmem [shape: s32[128,1], index: 5, kind: input, shape index: {}]   ;;  %s1860_s6 = inlined_call_operand.vmem [shape: bf16[128,8], index: 6, kind: output, shape index: {0}]   ;;  %s1861_s7 = inlined_call_operand.hbm [shape: f32[8,128], index: 7, kind: output, shape index: {1}]  }
   0x1   :  { %v1085_v0 = vld [vmem:[%s1855_s1] sm:$0xff]   ;;  %v1086_v1 = vld [vmem:[%s1855_s1 + $0x8] sm:$0xff]   ;;  %v29_v5 = vld [vmem:[%s1854_s0 + $0x10] sm:$0xff] }
   0x2   :  { %1032 = vmatprep.subr.bf16.mxu0 %v1085_v0  ;;  %v27_v2 = vld [vmem:[%s1854_s0] sm:$0xff]  ;;  %v28_v3 = vld [vmem:[%s1854_s0 + $0x8] sm:$0xff]  ;;  %v30_v6 = vld [vmem:[%s1854_s0 + $0x18] sm:$0xff] }
   0x3   :  { %1033 = vmatpush3.bf16.msra.mxu0 %v1085_v0  ;;  %v43_v4 = vpack.c.bf16 %v28_v3, %v27_v2  ;;  %v31_v7 = vld [vmem:[%s1854_s0 + $0x20] sm:$0xff]  ;;  %v32_v8 = vld [vmem:[%s1854_s0 + $0x28] sm:$0xff]  ;;  %v44_v9 = vpack.c.bf16 %v30_v6, %v29_v5 }
   0x4   :  { %1034 = vmatprep.subr.bf16.mxu0 %v1086_v1  ;;  %v45_v10 = vpack.c.bf16 %v32_v8, %v31_v7  ;;  %v1087_v11 = vld [vmem:[%s1857_s3] sm:$0xff]   ;;  %v1088_v12 = vld [vmem:[%s1857_s3 + $0x8] sm:$0xff]  }
   0x5   :  { %1036 = vmatprep.mubr.msk.bf16.mxu0 %vm74_vm0, %v43_v4  ;;  %1052 = vmatprep.subr.bf16.mxu1 %v1087_v11 }
   0x7   :  { %1035 = vmatpush3.bf16.msra.mxu0 %v1086_v1 }
   0xa   :  { %1037 = vmatmul.mubr.msk.bf16.vlgmr.msra.gmra.mrb[0].mxu0 %vm74_vm0, %v44_v9 }
   0xb   :  { %13 = vsyncpa [#allocation3], 0  ;;  %1040 = vmatprep.mubr.msk.bf16.mxu0 %vm74_vm0, %v45_v10  ;;  %v33_v13 = vld [vmem:[%s1854_s0 + $0x30] sm:$0xff]  ;;  %v34_v14 = vld [vmem:[%s1854_s0 + $0x38] sm:$0xff]  ;;  %1053 = vmatpush3.bf16.msra.mxu1 %v1087_v11  ;;  %v1179_v31 = vmov 0   ;;  %vm259_vm1 = vcmask 523264  }
   0xc   :  { %v35_v15 = vld [vmem:[%s1854_s0 + $0x40] sm:$0xff]  ;;  %v36_v16 = vld [vmem:[%s1854_s0 + $0x48] sm:$0xff]  ;;  %1054 = vmatprep.subr.bf16.mxu1 %v1088_v12  ;;  %v46_v17 = vpack.c.bf16 %v34_v14, %v33_v13  ;;  %v37_v19 = vld [vmem:[%s1854_s0 + $0x50] sm:$0xff]  ;;  %1084 = vset.pattern.permute.xlu1 %v1179_v31  ;;  %vm445_vm2 = vcmask 60416   ;;  %vm800_vm10 = vcmask 7168  }
   0xd   :  { %v47_v18 = vpack.c.bf16 %v36_v16, %v35_v15  ;;  %v38_v20 = vld [vmem:[%s1854_s0 + $0x58] sm:$0xff]  ;;  %v39_v21 = vld [vmem:[%s1854_s0 + $0x60] sm:$0xff]  ;;  %v40_v22 = vld [vmem:[%s1854_s0 + $0x68] sm:$0xff]  ;;  %1083 = vset.pattern.permute.xlu0 %v1179_v31 }
   0xe   :  { %v48_v23 = vpack.c.bf16 %v38_v20, %v37_v19  ;;  %v49_v24 = vpack.c.bf16 %v40_v22, %v39_v21  ;;  %v41_v25 = vld [vmem:[%s1854_s0 + $0x70] sm:$0xff]  ;;  %v42_v26 = vld [vmem:[%s1854_s0 + $0x78] sm:$0xff]  ;;  %v1299_v30 = vld [vmem:[%s1859_s5 + $0x8] sm:$0xff] }
   0xf   :  { %1055 = vmatpush3.bf16.msra.mxu1 %v1088_v12  ;;  %v50_v27 = vpack.c.bf16 %v42_v26, %v41_v25  ;;  %v1089_v28 = vld [vmem:[%s1857_s3 + $0x10] sm:$0xff]   ;;  %v1090_v29 = vld [vmem:[%s1857_s3 + $0x18] sm:$0xff]   ;;  %v1304_v32 = vld [vmem:[%s1859_s5] sm:$0xff]  ;;  %644 = vperm.xlu1 %1084, %v1299_v30   ;;  %vm753_vm7 = vcmp.ne.s32.totalorder %v1299_v30, 4294967295 }
  0x10   :  { %1056 = vmatprep.subr.bf16.mxu1 %v1089_v28  ;;  %641 = vperm.xlu0 %1083, %v1304_v32   ;;  %v1311_v33 = vld [vmem:[%s1859_s5 + $0x10] sm:$0xff]  ;;  %v1316_v34 = vld [vmem:[%s1859_s5 + $0x48] sm:$0xff]  ;;  %v1323_v35 = vld [vmem:[%s1859_s5 + $0x18] sm:$0xff]  ;;  %vm752_vm8 = vcmp.ne.s32.totalorder %v1304_v32, 4294967295 }
  0x11   :  { %v1328_v36 = vld [vmem:[%s1859_s5 + $0x58] sm:$0xff]  ;;  %v1335_v37 = vld [vmem:[%s1859_s5 + $0x20] sm:$0xff]  ;;  %v1340_v38 = vld [vmem:[%s1859_s5 + $0x68] sm:$0xff]  ;;  %vm754_vm11 = vcmp.ne.s32.totalorder %v1311_v33, 4294967295  ;;  %vm755_vm12 = vcmp.ne.s32.totalorder %v1323_v35, 4294967295 }
  0x12   :  { %1041 = vmatmul.mubr.msk.bf16.gmra.mrb[4].mxu0 %vm74_vm0, %v46_v17  ;;  %v1347_v39 = vld [vmem:[%s1859_s5 + $0x28] sm:$0xff]  ;;  %v1353_v40 = vld [vmem:[%s1859_s5 + $0x30] sm:$0xff]  ;;  %v1359_v41 = vld [vmem:[%s1859_s5 + $0x38] sm:$0xff]  ;;  %vm756_vm14 = vcmp.ne.s32.totalorder %v1335_v37, 4294967295 }
  0x13   :  { %1044 = vmatprep.mubr.msk.bf16.mxu0 %vm74_vm0, %v47_v18  ;;  %1057 = vmatpush3.bf16.msra.mxu1 %v1089_v28  ;;  %v1365_v42 = vld [vmem:[%s1859_s5 + $0x40] sm:$0xff]  ;;  %v1371_v43 = vld [vmem:[%s1859_s5 + $0x50] sm:$0xff] }
  0x14   :  { %1058 = vmatprep.subr.bf16.mxu1 %v1090_v29  ;;  %647 = vperm.xlu1 %1084, %v1311_v33   ;;  %v1377_v44 = vld [vmem:[%s1859_s5 + $0x60] sm:$0xff] }
  0x15   :  { %668 = vperm.xlu0 %1083, %v1316_v34   ;;  %v938_v45 = vld [vmem:[%s1856_s2] ss:$0 sm:$0xff] }
  0x17   :  { %1059 = vmatpush3.bf16.msra.mxu1 %v1090_v29 }
  0x18   :  { %650 = vperm.xlu1 %1084, %v1323_v35  }
  0x19   :  { %674 = vperm.xlu0 %1083, %v1328_v36  }
  0x1a   :  { %1045 = vmatmul.mubr.msk.bf16.gmra.mrb[8].mxu0 %vm74_vm0, %v48_v23 }
  0x1b   :  { %1048 = vmatprep.mubr.msk.bf16.mxu0 %vm74_vm0, %v49_v24 }
  0x1c   :  { %653 = vperm.xlu1 %1084, %v1335_v37  }
  0x1d   :  { %680 = vperm.xlu0 %1083, %v1340_v38  }
  0x20   :  { %656 = vperm.xlu1 %1084, %v1347_v39  }
  0x22   :  { %1049 = vmatmul.mubr.msk.bf16.gmra.mrb[12].mxu0 %vm74_vm0, %v50_v27  ;;  %vm757_vm0 = vcmp.ne.s32.totalorder %v1347_v39, 4294967295 }
  0x24   :  { %659 = vperm.xlu1 %1084, %v1353_v40  }
  0x28   :  { %662 = vperm.xlu1 %1084, %v1359_v41  }
  0x2c   :  { %665 = vperm.xlu1 %1084, %v1365_v42  }
  0x30   :  { %671 = vperm.xlu1 %1084, %v1371_v43  }
  0x34   :  { %677 = vperm.xlu1 %1084, %v1377_v44  }
  0xdd   :  { %v1038_v46 = vpop.f32.mrb[0].mxu0 }
  0xde   :  { %v142_v47 = vadd.f32 %v1038_v46, %v938_v45  ;;  %v133_v48 = vpop.f32.mrb[1].mxu0 }
  0xdf   :  { %v134_v49 = vadd.f32 %v938_v45, %v133_v48  ;;  %v1039_v50 = vpop.f32.mrb[2].mxu0 }
  0xe0   :  { %v145_v51 = vadd.f32 %v1039_v50, %v938_v45  ;;  %v136_v52 = vpop.f32.mrb[3].mxu0  ;;  %v198_v54 = vmax.f32 %v142_v47, 0.0 }
  0xe1   :  { %v137_v53 = vadd.f32 %v938_v45, %v136_v52  ;;  %v196_v56 = vmax.f32 %v134_v49, 0.0 }
  0xe2   :  { %v199_v55 = vmax.f32 %v145_v51, 0.0 }
  0xe3   :  { %v197_v57 = vmax.f32 %v137_v53, 0.0  ;;  %v1394_v53 = vld [vmem:[%s1858_s4] ss:$0 sm:$0xff] }
  0xe4   :  { %v213_v58 = vpack.c.bf16 %v199_v55, %v198_v54 }
  0xe5   :  { %v1042_v59 = vpop.f32.mrb[4].mxu0  ;;  %v212_v60 = vpack.c.bf16 %v197_v57, %v196_v56 }
  0xe6   :  { %v158_v61 = vadd.f32 %v1042_v59, %v938_v45  ;;  %v149_v62 = vpop.f32.mrb[5].mxu0 }
  0xe7   :  { %v150_v63 = vadd.f32 %v938_v45, %v149_v62  ;;  %v1043_v0 = vpop.f32.mrb[6].mxu0  ;;  %1060 = vmatprep.mubr.msk.bf16.mxu1 %vm259_vm1, %v212_v60 }
  0xe8   :  { %v161_v1 = vadd.f32 %v1043_v0, %v938_v45  ;;  %v152_v2 = vpop.f32.mrb[7].mxu0  ;;  %1061 = vmatmul.mubr.msk.bf16.vlgmr.msra.gmra.mrb[0].mxu1 %vm259_vm1, %v213_v58  ;;  %v202_v4 = vmax.f32 %v158_v61, 0.0 }
  0xe9   :  { %v153_v3 = vadd.f32 %v938_v45, %v152_v2  ;;  %v200_v6 = vmax.f32 %v150_v63, 0.0 }
  0xea   :  { %v203_v5 = vmax.f32 %v161_v1, 0.0 }
  0xeb   :  { %v201_v7 = vmax.f32 %v153_v3, 0.0 }
  0xec   :  { %v215_v8 = vpack.c.bf16 %v203_v5, %v202_v4 }
  0xed   :  { %v214_v9 = vpack.c.bf16 %v201_v7, %v200_v6  ;;  %v1046_v10 = vpop.f32.mrb[8].mxu0 }
  0xee   :  { %v174_v11 = vadd.f32 %v1046_v10, %v938_v45  ;;  %v165_v12 = vpop.f32.mrb[9].mxu0 }
  0xef   :  { %v166_v13 = vadd.f32 %v938_v45, %v165_v12  ;;  %v1047_v14 = vpop.f32.mrb[10].mxu0  ;;  %1064 = vmatprep.mubr.msk.bf16.mxu1 %vm259_vm1, %v214_v9 }
  0xf0   :  { %v206_v15 = vmax.f32 %v174_v11, 0.0  ;;  %v177_v16 = vadd.f32 %v1047_v14, %v938_v45  ;;  %v168_v17 = vpop.f32.mrb[11].mxu0  ;;  %1065 = vmatmul.mubr.msk.bf16.gmra.mrb[4].mxu1 %vm259_vm1, %v215_v8 }
  0xf1   :  { %v204_v18 = vmax.f32 %v166_v13, 0.0  ;;  %v169_v19 = vadd.f32 %v938_v45, %v168_v17 }
  0xf2   :  { %v207_v20 = vmax.f32 %v177_v16, 0.0 }
  0xf3   :  { %v205_v21 = vmax.f32 %v169_v19, 0.0 }
  0xf4   :  { %v217_v22 = vpack.c.bf16 %v207_v20, %v206_v15 }
  0xf5   :  { %v216_v23 = vpack.c.bf16 %v205_v21, %v204_v18  ;;  %v1050_v24 = vpop.f32.mrb[12].mxu0 }
  0xf6   :  { %v190_v25 = vadd.f32 %v1050_v24, %v938_v45  ;;  %v181_v26 = vpop.f32.mrb[13].mxu0 }
  0xf7   :  { %v182_v27 = vadd.f32 %v938_v45, %v181_v26  ;;  %v1051_v28 = vpop.f32.mrb[14].mxu0  ;;  %1068 = vmatprep.mubr.msk.bf16.mxu1 %vm259_vm1, %v216_v23 }
  0xf8   :  { %v210_v29 = vmax.f32 %v190_v25, 0.0  ;;  %v193_v31 = vadd.f32 %v1051_v28, %v938_v45  ;;  %v184_v46 = vpop.f32.mrb[15].mxu0  ;;  %1069 = vmatmul.mubr.msk.bf16.gmra.mrb[8].mxu1 %vm259_vm1, %v217_v22 }
  0xf9   :  { %v208_v47 = vmax.f32 %v182_v27, 0.0  ;;  %v185_v48 = vadd.f32 %v938_v45, %v184_v46 }
  0xfa   :  { %v211_v49 = vmax.f32 %v193_v31, 0.0 }
  0xfb   :  { %v209_v50 = vmax.f32 %v185_v48, 0.0 }
  0xfc   :  { %v219_v51 = vpack.c.bf16 %v211_v49, %v210_v29 }
  0xfd   :  { %v218_v52 = vpack.c.bf16 %v209_v50, %v208_v47 }
  0xff   :  { %1072 = vmatprep.mubr.msk.bf16.mxu1 %vm259_vm1, %v218_v52  ;;  %v1559_v52 = vld [vmem:[%s1859_s5 + $0x70] sm:$0xff] }
 0x100   :  { %1073 = vmatmul.mubr.msk.bf16.gmra.mrb[12].mxu1 %vm259_vm1, %v219_v51 }
 0x1bb   :  { %v1062_v54 = vpop.f32.mrb[0].mxu1 }
 0x1bc   :  { %v1397_v55 = vadd.f32 %v1062_v54, %v1394_v53  ;;  %v318_v56 = vpop.f32.mrb[1].mxu1  ;;  %v638_v54 = vlaneseq }
 0x1bd   :  { %v1400_v45 = vadd.f32 %v1394_v53, %v318_v56  ;;  %v1063_v57 = vpop.f32.mrb[2].mxu1  ;;  %v645_v56 = vpop.permute.xlu1 %644 }
 0x1be   :  { %v996_v58 = vpack.c.bf16 %v1397_v55, %v1397_v55  ;;  %v1405_v59 = vadd.f32 %v1063_v57, %v1394_v53  ;;  %482 = vmax.xlane.f32.xlu1 %v1397_v55  ;;  %v321_v60 = vpop.f32.mrb[3].mxu1  ;;  %v1568_v57 = vand.u32 127, %v638_v54 }
 0x1bf   :  { %v994_v61 = vpack.c.bf16 %v1400_v45, %v1400_v45  ;;  %v1411_v62 = vadd.f32 %v1394_v53, %v321_v60  ;;  %478 = vmax.xlane.f32.xlu0 %v1400_v45 }
 0x1c0   :  { %448 = vst.msk [vmem:[%s1860_s6 + $0x8] sm:$0xf] %vm445_vm2, %v996_v58  ;;  %v997_v63 = vpack.c.bf16 %v1405_v59, %v1405_v59  ;;  %v642_v58 = vpop.permute.xlu0 %641  ;;  %vm689_vm3 = vcmp.eq.s32.totalorder %v1568_v57, %v645_v56 }
 0x1c1   :  { %446 = vst.msk [vmem:[%s1860_s6] sm:$0xf] %vm445_vm2, %v994_v61  ;;  %v995_v0 = vpack.c.bf16 %v1411_v62, %v1411_v62  ;;  %v648_v60 = vpop.permute.xlu1 %647  ;;  %vm688_vm4 = vcmp.eq.s32.totalorder %v1568_v57, %v642_v58  ;;  %v705_v61 = vsel %vm689_vm3, %v1411_v62, 0.0 }
 0x1c2   :  { %449 = vst.msk [vmem:[%s1860_s6 + $0xc] sm:$0xf] %vm445_vm2, %v997_v63  ;;  %484 = vmax.xlane.f32.xlu1 %v1405_v59  ;;  %vm690_vm5 = vcmp.eq.s32.totalorder %v1568_v57, %v648_v60  ;;  %v704_v63 = vsel %vm688_vm4, %v1400_v45, 0.0  ;;  %vm759_vm4 = vcmp.ne.s32.totalorder %v1359_v41, 4294967295 }
 0x1c3   :  { %447 = vst.msk [vmem:[%s1860_s6 + $0x4] sm:$0xf] %vm445_vm2, %v995_v0  ;;  %v1066_v1 = vpop.f32.mrb[4].mxu1  ;;  %480 = vmax.xlane.f32.xlu0 %v1411_v62 }
 0x1c4   :  { %v1437_v2 = vadd.f32 %v1066_v1, %v1394_v53  ;;  %v334_v3 = vpop.f32.mrb[5].mxu1  ;;  %v706_v1 = vsel %vm690_vm5, %v1397_v55, 0.0 }
 0x1c5   :  { %v1440_v4 = vadd.f32 %v1394_v53, %v334_v3  ;;  %v1067_v5 = vpop.f32.mrb[6].mxu1  ;;  %v651_v0 = vpop.permute.xlu1 %650 }
 0x1c6   :  { %v1000_v6 = vpack.c.bf16 %v1437_v2, %v1437_v2  ;;  %v1445_v7 = vadd.f32 %v1067_v5, %v1394_v53  ;;  %v337_v8 = vpop.f32.mrb[7].mxu1  ;;  %vm691_vm6 = vcmp.eq.s32.totalorder %v1568_v57, %v651_v0 }
 0x1c7   :  { %v998_v9 = vpack.c.bf16 %v1440_v4, %v1440_v4  ;;  %v1450_v10 = vadd.f32 %v1394_v53, %v337_v8  ;;  %490 = vmax.xlane.f32.xlu0 %v1437_v2  ;;  %v707_v3 = vsel %vm691_vm6, %v1405_v59, 0.0  ;;  %vm760_vm6 = vcmp.ne.s32.totalorder %v1365_v42, 4294967295 }
 0x1c8   :  { %452 = vst.msk [vmem:[%s1860_s6 + $0x18] sm:$0xf] %vm445_vm2, %v1000_v6  ;;  %v1001_v11 = vpack.c.bf16 %v1445_v7, %v1445_v7  ;;  %492 = vmax.xlane.f32.xlu1 %v1445_v7 }
 0x1c9   :  { %450 = vst.msk [vmem:[%s1860_s6 + $0x10] sm:$0xf] %vm445_vm2, %v998_v9  ;;  %v999_v12 = vpack.c.bf16 %v1450_v10, %v1450_v10  ;;  %v1578_v5 = vpop.permute.xlu1 %653 }
 0x1ca   :  { %453 = vst.msk [vmem:[%s1860_s6 + $0x1c] sm:$0xf] %vm445_vm2, %v1001_v11  ;;  %vm692_vm9 = vcmp.eq.s32.totalorder %v1568_v57, %v1578_v5 }
 0x1cb   :  { %451 = vst.msk [vmem:[%s1860_s6 + $0x14] sm:$0xf] %vm445_vm2, %v999_v12  ;;  %v1070_v13 = vpop.f32.mrb[8].mxu1  ;;  %486 = vmax.xlane.f32.xlu0 %v1440_v4  ;;  %v1588_v12 = vpop.permute.xlu0 %668  ;;  %v708_v5 = vsel %vm692_vm9, %v1440_v4, 0.0 }
 0x1cc   :  { %v1476_v14 = vadd.f32 %v1070_v13, %v1394_v53  ;;  %v350_v15 = vpop.f32.mrb[9].mxu1  ;;  %488 = vmax.xlane.f32.xlu1 %v1450_v10 }
 0x1cd   :  { %v1480_v16 = vadd.f32 %v1394_v53, %v350_v15  ;;  %v1071_v17 = vpop.f32.mrb[10].mxu1  ;;  %v1580_v6 = vpop.permute.xlu1 %656 }
 0x1ce   :  { %v1004_v18 = vpack.c.bf16 %v1476_v14, %v1476_v14  ;;  %v1485_v19 = vadd.f32 %v1071_v17, %v1394_v53  ;;  %v353_v20 = vpop.f32.mrb[11].mxu1  ;;  %vm693_vm13 = vcmp.eq.s32.totalorder %v1568_v57, %v1580_v6 }
 0x1cf   :  { %v1002_v21 = vpack.c.bf16 %v1480_v16, %v1480_v16  ;;  %v1490_v22 = vadd.f32 %v1394_v53, %v353_v20  ;;  %498 = vmax.xlane.f32.xlu0 %v1476_v14  ;;  %v1592_v15 = vpop.permute.xlu0 %674 }
 0x1d0   :  { %456 = vst.msk [vmem:[%s1860_s6 + $0x28] sm:$0xf] %vm445_vm2, %v1004_v18  ;;  %v1005_v23 = vpack.c.bf16 %v1485_v19, %v1485_v19  ;;  %500 = vmax.xlane.f32.xlu1 %v1485_v19 }
 0x1d1   :  { %454 = vst.msk [vmem:[%s1860_s6 + $0x20] sm:$0xf] %vm445_vm2, %v1002_v21  ;;  %v1003_v24 = vpack.c.bf16 %v1490_v22, %v1490_v22  ;;  %v1582_v8 = vpop.permute.xlu1 %659 }
 0x1d2   :  { %457 = vst.msk [vmem:[%s1860_s6 + $0x2c] sm:$0xf] %vm445_vm2, %v1005_v23  ;;  %vm694_vm15 = vcmp.eq.s32.totalorder %v1568_v57, %v1582_v8 }
 0x1d3   :  { %455 = vst.msk [vmem:[%s1860_s6 + $0x24] sm:$0xf] %vm445_vm2, %v1003_v24  ;;  %v1074_v25 = vpop.f32.mrb[12].mxu1  ;;  %494 = vmax.xlane.f32.xlu0 %v1480_v16  ;;  %v1596_v18 = vpop.permute.xlu0 %680 }
 0x1d4   :  { %v1516_v26 = vadd.f32 %v1074_v25, %v1394_v53  ;;  %v366_v27 = vpop.f32.mrb[13].mxu1  ;;  %496 = vmax.xlane.f32.xlu1 %v1490_v22 }
 0x1d5   :  { %v1520_v28 = vadd.f32 %v1394_v53, %v366_v27  ;;  %v1075_v29 = vpop.f32.mrb[14].mxu1  ;;  %v1584_v9 = vpop.permute.xlu1 %662 }
 0x1d6   :  { %v1008_v31 = vpack.c.bf16 %v1516_v26, %v1516_v26  ;;  %v1525_v46 = vadd.f32 %v1075_v29, %v1394_v53  ;;  %v369_v47 = vpop.f32.mrb[15].mxu1  ;;  %vm695_vm1 = vcmp.eq.s32.totalorder %v1568_v57, %v1584_v9 }
 0x1d7   :  { %v1006_v48 = vpack.c.bf16 %v1520_v28, %v1520_v28  ;;  %v1530_v49 = vadd.f32 %v1394_v53, %v369_v47  ;;  %506 = vmax.xlane.f32.xlu0 %v1516_v26  ;;  %v1565_v53 = vld [vmem:[%s1859_s5 + $0x78] sm:$0xff] }
 0x1d8   :  { %460 = vst.msk [vmem:[%s1860_s6 + $0x38] sm:$0xf] %vm445_vm2, %v1008_v31  ;;  %v1009_v50 = vpack.c.bf16 %v1525_v46, %v1525_v46  ;;  %508 = vmax.xlane.f32.xlu1 %v1525_v46 }
 0x1d9   :  { %458 = vst.msk [vmem:[%s1860_s6 + $0x30] sm:$0xf] %vm445_vm2, %v1006_v48  ;;  %v1007_v51 = vpack.c.bf16 %v1530_v49, %v1530_v49  ;;  %v1586_v11 = vpop.permute.xlu1 %665 }
 0x1da   :  { %461 = vst.msk [vmem:[%s1860_s6 + $0x3c] sm:$0xf] %vm445_vm2, %v1009_v50  ;;  %vm696_vm3 = vcmp.eq.s32.totalorder %v1568_v57, %v1586_v11 }
 0x1db   :  { %459 = vst.msk [vmem:[%s1860_s6 + $0x34] sm:$0xf] %vm445_vm2, %v1007_v51  ;;  %502 = vmax.xlane.f32.xlu0 %v1520_v28  ;;  %vm758_vm2 = vcmp.ne.s32.totalorder %v1353_v40, 4294967295  ;;  %s1181_s6 = smov [#allocation2]  }
 0x1dc   :  { %504 = vmax.xlane.f32.xlu1 %v1530_v49  ;;  %s928_s30 = sshll.u32 %s1181_s6, 4  ;;  %s929_s30 = int_to_ptr.vmem [resolvable:$true] %s928_s30 }
 0x1dd   :  { %v1590_v13 = vpop.permute.xlu1 %671  ;;  %s1155_s9 = scalar_lea.vmem %s929_s30, 128  ;;  %p1160_p1 = scmp.lt.s32.totalorder %s929_s30, %s929_s30 }
 0x1de   :  { %vm698_vm5 = vcmp.eq.s32.totalorder %v1568_v57, %v1590_v13  ;;  %p1156_p0 = scmp.ne.s32.totalorder %s929_s30, %s1155_s9  ;;  %p1161_p2 = scmp.lt.s32.totalorder %s1155_s9, %s1155_s9 }
 0x1e0   :  { %p1162_p3 = por %p1161_p2, %p1160_p1 }
 0x1e1   :  { %v1594_v17 = vpop.permute.xlu1 %677 }
 0x1e2   :  { %vm700_vm9 = vcmp.eq.s32.totalorder %v1568_v57, %v1594_v17  ;;  %p1163_p4 = pnand %p1162_p3, %p1156_p0 }
 0x1ed   :  { %683 = vperm.xlu1 %1084, %v1559_v52  }
 0x1f1   :  { %686 = vperm.xlu0 %1083, %v1565_v53  }
 0x210   :  { %722 = vadd.xlane.f32.xlu0 %v705_v61 }
 0x211   :  { %720 = vadd.xlane.f32.xlu1 %v704_v63 }
 0x214   :  { %724 = vadd.xlane.f32.xlu0 %v706_v1 }
 0x218   :  { %726 = vadd.xlane.f32.xlu0 %v707_v3 }
 0x24b   :  { %v1598_v20 = vpop.xlane.xlu1 %482 }
 0x24c   :  { %v512_v21 = vsub.f32 %v1397_v55, %v1598_v20  ;;  %v1602_v23 = vpop.xlane.xlu0 %478 }
 0x24d   :  { %v510_v24 = vsub.f32 %v1400_v45, %v1602_v23 }
 0x24e   :  { %v530_v25 = vmul.f32 1.442695, %v512_v21 }
 0x24f   :  { %v526_v27 = vmul.f32 1.442695, %v510_v24  ;;  %v1606_v29 = vpop.xlane.xlu1 %484 }
 0x250   :  { %1091 = vpow2.f32 %v530_v25  ;;  %v513_v31 = vsub.f32 %v1405_v59, %v1606_v29  ;;  %v1610_v47 = vpop.xlane.xlu0 %480 }
 0x251   :  { %1093 = vpow2.f32 %v526_v27  ;;  %v511_v48 = vsub.f32 %v1411_v62, %v1610_v47 }
 0x252   :  { %v532_v55 = vmul.f32 1.442695, %v513_v31 }
 0x253   :  { %v528_v50 = vmul.f32 1.442695, %v511_v48 }
 0x254   :  { %1095 = vpow2.f32 %v532_v55  ;;  %v1614_v51 = vpop.xlane.xlu0 %490 }
 0x255   :  { %1097 = vpow2.f32 %v528_v50  ;;  %v516_v45 = vsub.f32 %v1437_v2, %v1614_v51  ;;  %v1618_v54 = vpop.xlane.xlu1 %492 }
 0x256   :  { %v517_v59 = vsub.f32 %v1445_v7, %v1618_v54 }
 0x257   :  { %v538_v56 = vmul.f32 1.442695, %v516_v45 }
 0x258   :  { %v540_v58 = vmul.f32 1.442695, %v517_v59  ;;  %v1622_v60 = vpop.xlane.xlu0 %486 }
 0x259   :  { %1099 = vpow2.f32 %v538_v56  ;;  %v514_v62 = vsub.f32 %v1440_v4, %v1622_v60  ;;  %v1626_v61 = vpop.xlane.xlu1 %488 }
 0x25a   :  { %v1092_v63 = vpop.eup %1091  ;;  %1101 = vpow2.f32 %v540_v58  ;;  %v515_v0 = vsub.f32 %v1450_v10, %v1626_v61 }
 0x25b   :  { %v1094_v1 = vpop.eup %1093  ;;  %v534_v3 = vmul.f32 1.442695, %v514_v62  ;;  %562 = vadd.xlane.f32.xlu0 %v1092_v63 }
 0x25c   :  { %v536_v21 = vmul.f32 1.442695, %v515_v0  ;;  %v1630_v24 = vpop.xlane.xlu0 %498  ;;  %558 = vadd.xlane.f32.xlu1 %v1094_v1 }
 0x25d   :  { %1103 = vpow2.f32 %v534_v3  ;;  %v520_v25 = vsub.f32 %v1476_v14, %v1630_v24  ;;  %v1634_v27 = vpop.xlane.xlu1 %500 }
 0x25e   :  { %1869 = vst [vmem:[#allocation5_spill] sm:$0xff] %v1634_v27  ;;  %v1096_v31 = vpop.eup %1095  ;;  %1105 = vpow2.f32 %v536_v21  ;;  %v521_v48 = vsub.f32 %v1485_v19, %v1634_v27 }
 0x25f   :  { %v1098_v55 = vpop.eup %1097  ;;  %v546_v50 = vmul.f32 1.442695, %v520_v25 }
 0x260   :  { %560 = vadd.xlane.f32.xlu0 %v1098_v55  ;;  %v1638_v45 = vpop.xlane.xlu0 %494  ;;  %564 = vadd.xlane.f32.xlu1 %v1096_v31  ;;  %v548_v58 = vmul.f32 1.442695, %v521_v48 }
 0x261   :  { %1107 = vpow2.f32 %v546_v50  ;;  %v518_v59 = vsub.f32 %v1480_v16, %v1638_v45  ;;  %v1642_v56 = vpop.xlane.xlu1 %496  ;;  %v1863_v50 = vmov 0.0  }
 0x262   :  { %1870 = vst [vmem:[#allocation6_spill] sm:$0xff] %v1642_v56  ;;  %v519_v62 = vsub.f32 %v1490_v22, %v1642_v56 }
 0x263   :  { %v1100_v63 = vpop.eup %1099  ;;  %v542_v0 = vmul.f32 1.442695, %v518_v59  ;;  %v979_v59 = vsel %vm753_vm7, 1.0, %v1863_v50 }
 0x264   :  { %v1102_v1 = vpop.eup %1101  ;;  %570 = vadd.xlane.f32.xlu0 %v1100_v63  ;;  %v1646_v3 = vpop.xlane.xlu0 %506  ;;  %v544_v25 = vmul.f32 1.442695, %v519_v62  ;;  %v978_v63 = vsel %vm752_vm8, 1.0, %v1863_v50 }
 0x265   :  { %1871 = vst [vmem:[#allocation7_spill] sm:$0xff] %v1646_v3  ;;  %1109 = vpow2.f32 %v542_v0  ;;  %v1648_v21 = vpop.xlane.xlu1 %508  ;;  %572 = vadd.xlane.f32.xlu1 %v1102_v1  ;;  %v524_v31 = vsub.f32 %v1516_v26, %v1646_v3  ;;  %v874_v3 = vsel %vm800_vm10, %v979_v59, 0.0  ;;  %v873_v50 = vsel %vm800_vm10, %v978_v63, 0.0 }
 0x266   :  { %1111 = vpow2.f32 %v548_v58 }
 0x267   :  { %v1104_v55 = vpop.eup %1103  ;;  %1113 = vpow2.f32 %v544_v25  ;;  %v554_v62 = vmul.f32 1.442695, %v524_v31  ;;  %v875_v25 = vadd.f32 %v874_v3, %v873_v50  ;;  %v525_v50 = vsub.f32 %v1525_v46, %v1648_v21 }
 0x268   :  { %v1106_v48 = vpop.eup %1105  ;;  %566 = vadd.xlane.f32.xlu0 %v1104_v55  ;;  %v1662_v58 = vpop.xlane.xlu0 %502  ;;  %v1873_v55 = vmov 0.0  }
 0x269   :  { %1872 = vst [vmem:[#allocation8_spill] sm:$0xff] %v1662_v58  ;;  %568 = vadd.xlane.f32.xlu1 %v1106_v48  ;;  %v522_v0 = vsub.f32 %v1520_v28, %v1662_v58  ;;  %v1669_v27 = vpop.xlane.xlu1 %504  ;;  %v980_v48 = vsel %vm754_vm11, 1.0, %v1873_v55  ;;  %1115 = vpow2.f32 %v554_v62  ;;  %v981_v4 = vsel %vm755_vm12, 1.0, %v1873_v55 }
 0x26a   :  { %v523_v59 = vsub.f32 %v1530_v49, %v1669_v27  ;;  %v876_v56 = vsel %vm800_vm10, %v980_v48, 0.0  ;;  %v982_v48 = vsel %vm756_vm14, 1.0, %v1873_v55 }
 0x26b   :  { %v1108_v1 = vpop.eup %1107  ;;  %v550_v31 = vmul.f32 1.442695, %v522_v0  ;;  %v877_v3 = vadd.f32 %v876_v56, %v875_v25  ;;  %v878_v0 = vsel %vm800_vm10, %v981_v4, 0.0  ;;  %v556_v56 = vmul.f32 1.442695, %v525_v50 }
 0x26c   :  { %728 = vadd.xlane.f32.xlu0 %v708_v5  ;;  %v552_v62 = vmul.f32 1.442695, %v523_v59  ;;  %v710_v25 = vsel %vm694_vm15, %v1437_v2, 0.0  ;;  %v984_v2 = vsel %vm758_vm2, 1.0, %v1873_v55  ;;  %v712_v50 = vsel %vm696_vm3, %v1480_v16, 0.0 }
 0x26d   :  { %578 = vadd.xlane.f32.xlu1 %v1108_v1  ;;  %1117 = vpow2.f32 %v550_v31  ;;  %v709_v1 = vsel %vm693_vm13, %v1450_v10, 0.0  ;;  %v879_v6 = vadd.f32 %v878_v0, %v877_v3  ;;  %v983_v31 = vsel %vm757_vm0, 1.0, %v1873_v55  ;;  %v684_v13 = vpop.permute.xlu1 %683 }
 0x26e   :  { %1119 = vpow2.f32 %v552_v62  ;;  %v882_v59 = vsel %vm800_vm10, %v983_v31, 0.0  ;;  %v884_v3 = vsel %vm800_vm10, %v984_v2, 0.0  ;;  %v986_v16 = vsel %vm760_vm6, 1.0, %v1873_v55 }
 0x26f   :  { %v1110_v58 = vpop.eup %1109  ;;  %1121 = vpow2.f32 %v556_v56  ;;  %vm1868_vm13 = vcmp.ne.s32.totalorder %v1316_v34, 4294967295  ;;  %vm697_vm15 = vcmp.eq.s32.totalorder %v1568_v57, %v1588_v12  ;;  %vm762_vm3 = vcmp.ne.s32.totalorder %v1371_v43, 4294967295 }
 0x270   :  { %v1112_v63 = vpop.eup %1111  ;;  %574 = vadd.xlane.f32.xlu0 %v1110_v58  ;;  %v880_v58 = vsel %vm800_vm10, %v982_v48, 0.0  ;;  %v987_v56 = vsel %vm1868_vm13, 1.0, %v1873_v55  ;;  %v713_v17 = vsel %vm697_vm15, %v1490_v22, 0.0  ;;  %vm701_vm15 = vcmp.eq.s32.totalorder %v1568_v57, %v1596_v18 }
 0x271   :  { %580 = vadd.xlane.f32.xlu1 %v1112_v63  ;;  %v1114_v5 = vpop.eup %1113  ;;  %v881_v8 = vadd.f32 %v880_v58, %v879_v6  ;;  %v711_v63 = vsel %vm695_vm1, %v1445_v7, 0.0  ;;  %v985_v7 = vsel %vm759_vm4, 1.0, %v1873_v55  ;;  %v888_v6 = vsel %vm800_vm10, %v986_v16, 0.0 }
 0x272   :  { %v886_v0 = vsel %vm800_vm10, %v985_v7, 0.0  ;;  %vm702_vm1 = vcmp.eq.s32.totalorder %v1568_v57, %v684_v13  ;;  %v890_v58 = vsel %vm800_vm10, %v987_v56, 0.0  ;;  %vm765_vm13 = vcmp.ne.s32.totalorder %v1340_v38, 4294967295 }
 0x273   :  { %v1116_v10 = vpop.eup %1115  ;;  %v883_v9 = vadd.f32 %v882_v59, %v881_v8  ;;  %v717_v8 = vsel %vm701_vm15, %v1530_v49, 0.0  ;;  %v991_v2 = vsel %vm765_vm13, 1.0, %v1873_v55  ;;  %vm766_vm15 = vcmp.ne.s32.totalorder %v1559_v52, 4294967295 }
 0x274   :  { %730 = vadd.xlane.f32.xlu0 %v709_v1  ;;  %v714_v1 = vsel %vm698_vm5, %v1476_v14, 0.0  ;;  %v716_v14 = vsel %vm700_vm9, %v1520_v28, 0.0  ;;  %vm699_vm5 = vcmp.eq.s32.totalorder %v1568_v57, %v1592_v15  ;;  %v718_v28 = vsel %vm702_vm1, %v1516_v26, 0.0  ;;  %v687_v15 = vpop.permute.xlu0 %686 }
 0x275   :  { %576 = vadd.xlane.f32.xlu1 %v1114_v5  ;;  %v885_v11 = vadd.f32 %v884_v3, %v883_v9  ;;  %vm763_vm9 = vcmp.ne.s32.totalorder %v1328_v36, 4294967295  ;;  %vm764_vm1 = vcmp.ne.s32.totalorder %v1377_v44, 4294967295  ;;  %v898_v3 = vsel %vm800_vm10, %v991_v2, 0.0 }
 0x276   :  { %v989_v26 = vsel %vm763_vm9, 1.0, %v1873_v55  ;;  %v990_v18 = vsel %vm764_vm1, 1.0, %v1873_v55 }
 0x277   :  { %v1118_v4 = vpop.eup %1117  ;;  %v887_v48 = vadd.f32 %v886_v0, %v885_v11  ;;  %v894_v59 = vsel %vm800_vm10, %v989_v26, 0.0  ;;  %v896_v49 = vsel %vm800_vm10, %v990_v18, 0.0 }
 0x278   :  { %732 = vadd.xlane.f32.xlu0 %v710_v25  ;;  %v1120_v62 = vpop.eup %1119  ;;  %v988_v25 = vsel %vm762_vm3, 1.0, %v1873_v55 }
 0x279   :  { %586 = vadd.xlane.f32.xlu1 %v1116_v10  ;;  %v1122_v5 = vpop.eup %1121  ;;  %v889_v12 = vadd.f32 %v888_v6, %v887_v48  ;;  %v715_v10 = vsel %vm699_vm5, %v1485_v19, 0.0  ;;  %v892_v31 = vsel %vm800_vm10, %v988_v25, 0.0  ;;  %vm703_vm5 = vcmp.eq.s32.totalorder %v1568_v57, %v687_v15 }
 0x27b   :  { %v891_v22 = vadd.f32 %v890_v58, %v889_v12 }
 0x27c   :  { %734 = vadd.xlane.f32.xlu0 %v711_v63  ;;  %v719_v63 = vsel %vm703_vm5, %v1525_v46, 0.0  ;;  %vm767_vm5 = vcmp.ne.s32.totalorder %v1565_v53, 4294967295 }
 0x27d   :  { %582 = vadd.xlane.f32.xlu1 %v1118_v4  ;;  %v893_v19 = vadd.f32 %v892_v31, %v891_v22  ;;  %v993_v7 = vsel %vm767_vm5, 1.0, %v1873_v55 }
 0x27e   :  { %v902_v0 = vsel %vm800_vm10, %v993_v7, 0.0 }
 0x27f   :  { %v895_v4 = vadd.f32 %v894_v59, %v893_v19 }
 0x280   :  { %736 = vadd.xlane.f32.xlu0 %v712_v50  ;;  %v992_v50 = vsel %vm766_vm15, 1.0, %v1873_v55 }
 0x281   :  { %584 = vadd.xlane.f32.xlu1 %v1120_v62  ;;  %v897_v9 = vadd.f32 %v896_v49, %v895_v4  ;;  %v900_v62 = vsel %vm800_vm10, %v992_v50, 0.0 }
 0x283   :  { %v899_v46 = vadd.f32 %v898_v3, %v897_v9 }
 0x284   :  { %740 = vadd.xlane.f32.xlu0 %v714_v1 }
 0x285   :  { %588 = vadd.xlane.f32.xlu1 %v1122_v5  ;;  %v901_v11 = vadd.f32 %v900_v62, %v899_v46 }
 0x287   :  { %v903_v1 = vadd.f32 %v902_v0, %v901_v11 }
 0x288   :  { %744 = vadd.xlane.f32.xlu0 %v716_v14 }
 0x289   :  { %738 = vadd.xlane.f32.xlu1 %v713_v17 }
 0x28c   :  { %748 = vadd.xlane.f32.xlu0 %v718_v28 }
 0x28d   :  { %742 = vadd.xlane.f32.xlu1 %v715_v10 }
 0x291   :  { %746 = vadd.xlane.f32.xlu1 %v717_v8 }
 0x295   :  { %750 = vadd.xlane.f32.xlu1 %v719_v63 }
 0x299   :  { %904 = vadd.xlane.f32.xlu1 %v903_v1 }
 0x29d   :  { %v723_v5 = vpop.xlane.xlu0 %722 }
 0x29e   :  { %v721_v48 = vpop.xlane.xlu1 %720 }
 0x2a1   :  { %v725_v16 = vpop.xlane.xlu0 %724 }
 0x2a5   :  { %v727_v13 = vpop.xlane.xlu0 %726 }
 0x2e8   :  { %v563_v6 = vpop.xlane.xlu0 %562 }
 0x2e9   :  { %1123 = vlog2.f32 %v563_v6  ;;  %v559_v14 = vpop.xlane.xlu1 %558 }
 0x2ea   :  { %1125 = vlog2.f32 %v559_v14 }
 0x2ed   :  { %v561_v56 = vpop.xlane.xlu0 %560  ;;  %v565_v17 = vpop.xlane.xlu1 %564 }
 0x2ee   :  { %1127 = vlog2.f32 %v561_v56 }
 0x2ef   :  { %1129 = vlog2.f32 %v565_v17 }
 0x2f1   :  { %v571_v12 = vpop.xlane.xlu0 %570 }
 0x2f2   :  { %v573_v58 = vpop.xlane.xlu1 %572  ;;  %1131 = vlog2.f32 %v571_v12 }
 0x2f3   :  { %v1124_v55 = vpop.eup %1123 }
 0x2f4   :  { %v1126_v28 = vpop.eup %1125  ;;  %v595_v25 = vmul.f32 0.6931472, %v1124_v55 }
 0x2f5   :  { %v591_v10 = vmul.f32 0.6931472, %v1126_v28  ;;  %v567_v22 = vpop.xlane.xlu0 %566 }
 0x2f6   :  { %1133 = vlog2.f32 %v567_v22  ;;  %v569_v15 = vpop.xlane.xlu1 %568  ;;  %v624_v31 = vadd.f32 %v595_v25, %v1598_v20 }
 0x2f7   :  { %v622_v26 = vadd.f32 %v591_v10, %v1602_v23  ;;  %1135 = vlog2.f32 %v569_v15 }
 0x2f8   :  { %v1128_v8 = vpop.eup %1127  ;;  %1137 = vlog2.f32 %v573_v58  ;;  %v770_v2 = vsub.f32 %v624_v31, %v725_v16 }
 0x2f9   :  { %v1130_v19 = vpop.eup %1129  ;;  %v768_v59 = vsub.f32 %v622_v26, %v721_v48  ;;  %v593_v18 = vmul.f32 0.6931472, %v1128_v8  ;;  %v729_v63 = vpop.xlane.xlu0 %728 }
 0x2fa   :  { %v597_v4 = vmul.f32 0.6931472, %v1130_v19  ;;  %v579_v49 = vpop.xlane.xlu1 %578  ;;  %v786_v7 = vsel %vm754_vm11, %v770_v2, 0.0 }
 0x2fb   :  { %v623_v9 = vadd.f32 %v593_v18, %v1610_v47  ;;  %v784_v50 = vsel %vm752_vm8, %v768_v59, 0.0  ;;  %v804_v56 = vsel %vm800_vm10, %v786_v7, 0.0  ;;  %vm914_vm8 = vcmp.eq.s32.totalorder %v1568_v57, 1 }
 0x2fc   :  { %v625_v3 = vadd.f32 %v597_v4, %v1606_v29  ;;  %v1132_v62 = vpop.eup %1131  ;;  %v801_v47 = vsel %vm800_vm10, %v784_v50, 0.0 }
 0x2fd   :  { %v769_v20 = vsub.f32 %v623_v9, %v723_v5  ;;  %v575_v46 = vpop.xlane.xlu0 %574  ;;  %v603_v17 = vmul.f32 0.6931472, %v1132_v62 }
 0x2fe   :  { %1139 = vlog2.f32 %v575_v46  ;;  %v581_v23 = vpop.xlane.xlu1 %580  ;;  %v771_v0 = vsub.f32 %v625_v3, %v727_v13 }
 0x2ff   :  { %v785_v11 = vsel %vm753_vm7, %v769_v20, 0.0  ;;  %1141 = vlog2.f32 %v579_v49  ;;  %vm1876_vm7 = vcmp.ne.s32.totalorder %v1316_v34, 4294967295 }
 0x300   :  { %v1134_v1 = vpop.eup %1133  ;;  %v802_v29 = vsel %vm800_vm10, %v785_v11, 0.0  ;;  %v787_v13 = vsel %vm755_vm12, %v771_v0, 0.0 }
 0x301   :  { %v1136_v16 = vpop.eup %1135  ;;  %v599_v32 = vmul.f32 0.6931472, %v1134_v1  ;;  %v803_v48 = vadd.f32 %v802_v29, %v801_v47  ;;  %v731_v5 = vpop.xlane.xlu0 %730  ;;  %v806_v10 = vsel %vm800_vm10, %v787_v13, 0.0 }
 0x302   :  { %v1138_v6 = vpop.eup %1137  ;;  %v601_v14 = vmul.f32 0.6931472, %v1136_v16  ;;  %v577_v33 = vpop.xlane.xlu1 %576 }
 0x303   :  { %v626_v30 = vadd.f32 %v599_v32, %v1622_v60  ;;  %v805_v12 = vadd.f32 %v804_v56, %v803_v48  ;;  %1143 = vlog2.f32 %v577_v33  ;;  %v605_v55 = vmul.f32 0.6931472, %v1138_v6  ;;  %v1874_v56 = vld [vmem:[#allocation6_spill] sm:$0xff] }
 0x304   :  { %v627_v58 = vadd.f32 %v601_v14, %v1626_v61  ;;  %v628_v60 = vadd.f32 %v603_v17, %v1614_v51  ;;  %1145 = vlog2.f32 %v581_v23 }
 0x305   :  { %v772_v28 = vsub.f32 %v626_v30, %v729_v63  ;;  %v733_v25 = vpop.xlane.xlu0 %732  ;;  %v807_v26 = vadd.f32 %v806_v10, %v805_v12  ;;  %v629_v4 = vadd.f32 %v605_v55, %v1618_v54  ;;  %v1875_v55 = vld [vmem:[#allocation8_spill] sm:$0xff] }
 0x306   :  { %v773_v22 = vsub.f32 %v627_v58, %v731_v5  ;;  %v587_v15 = vpop.xlane.xlu1 %586  ;;  %v774_v18 = vsub.f32 %v628_v60, %v733_v25 }
 0x307   :  { %v788_v31 = vsel %vm756_vm14, %v772_v28, 0.0  ;;  %1147 = vlog2.f32 %v587_v15 }
 0x308   :  { %v1140_v8 = vpop.eup %1139  ;;  %v808_v35 = vsel %vm800_vm10, %v788_v31, 0.0  ;;  %v789_v61 = vsel %vm757_vm0, %v773_v22, 0.0  ;;  %v790_v39 = vsel %vm758_vm2, %v774_v18, 0.0  ;;  %v1877_v22 = vld [vmem:[#allocation5_spill] sm:$0xff] }
 0x309   :  { %v809_v19 = vadd.f32 %v808_v35, %v807_v26  ;;  %v607_v59 = vmul.f32 0.6931472, %v1140_v8  ;;  %v735_v63 = vpop.xlane.xlu0 %734  ;;  %v810_v49 = vsel %vm800_vm10, %v789_v61, 0.0  ;;  %v1142_v9 = vpop.eup %1141  ;;  %v812_v7 = vsel %vm800_vm10, %v790_v39, 0.0 }
 0x30a   :  { %v583_v37 = vpop.xlane.xlu1 %582  ;;  %v775_v2 = vsub.f32 %v629_v4, %v735_v63  ;;  %v611_v23 = vmul.f32 0.6931472, %v1142_v9 }
 0x30b   :  { %1149 = vlog2.f32 %v583_v37  ;;  %v630_v51 = vadd.f32 %v607_v59, %v1638_v45  ;;  %v811_v3 = vadd.f32 %v810_v49, %v809_v19  ;;  %v1878_v19 = vld [vmem:[#allocation7_spill] sm:$0xff] }
 0x30c   :  { %v791_v54 = vsel %vm759_vm4, %v775_v2, 0.0  ;;  %v632_v16 = vadd.f32 %v611_v23, %v1630_v24 }
 0x30d   :  { %v737_v50 = vpop.xlane.xlu0 %736  ;;  %v1144_v20 = vpop.eup %1143  ;;  %v813_v0 = vadd.f32 %v812_v7, %v811_v3  ;;  %v814_v47 = vsel %vm800_vm10, %v791_v54, 0.0 }
 0x30e   :  { %v585_v46 = vpop.xlane.xlu1 %584  ;;  %v776_v62 = vsub.f32 %v630_v51, %v737_v50  ;;  %v609_v11 = vmul.f32 0.6931472, %v1144_v20  ;;  %v1146_v45 = vpop.eup %1145 }
 0x30f   :  { %1151 = vlog2.f32 %v585_v46  ;;  %v613_v48 = vmul.f32 0.6931472, %v1146_v45  ;;  %v815_v5 = vadd.f32 %v814_v47, %v813_v0 }
 0x310   :  { %v792_v40 = vsel %vm760_vm6, %v776_v62, 0.0  ;;  %v631_v33 = vadd.f32 %v609_v11, %v1874_v56 }
 0x311   :  { %v741_v1 = vpop.xlane.xlu0 %740  ;;  %v1148_v32 = vpop.eup %1147  ;;  %v816_v30 = vsel %vm800_vm10, %v792_v40, 0.0  ;;  %v633_v15 = vadd.f32 %v613_v48, %v1877_v22 }
 0x312   :  { %v589_v29 = vpop.xlane.xlu1 %588  ;;  %v778_v6 = vsub.f32 %v632_v16, %v741_v1  ;;  %v619_v12 = vmul.f32 0.6931472, %v1148_v32  ;;  %v817_v25 = vadd.f32 %v816_v30, %v815_v5 }
 0x313   :  { %1153 = vlog2.f32 %v589_v29 }
 0x314   :  { %v794_v24 = vsel %vm762_vm3, %v778_v6, 0.0  ;;  %v636_v59 = vadd.f32 %v619_v12, %v1878_v19 }
 0x315   :  { %v1150_v41 = vpop.eup %1149  ;;  %v745_v14 = vpop.xlane.xlu0 %744  ;;  %v820_v63 = vsel %vm800_vm10, %v794_v24, 0.0 }
 0x316   :  { %v615_v17 = vmul.f32 0.6931472, %v1150_v41  ;;  %v739_v13 = vpop.xlane.xlu1 %738 }
 0x317   :  { %v777_v58 = vsub.f32 %v631_v33, %v739_v13 }
 0x318   :  { %v634_v42 = vadd.f32 %v615_v17, %v1875_v55 }
 0x319   :  { %v1152_v28 = vpop.eup %1151  ;;  %v793_v10 = vsel %vm1876_vm7, %v777_v58, 0.0  ;;  %v749_v8 = vpop.xlane.xlu0 %748 }
 0x31a   :  { %v617_v31 = vmul.f32 0.6931472, %v1152_v28  ;;  %v780_v26 = vsub.f32 %v634_v42, %v745_v14  ;;  %v818_v60 = vsel %vm800_vm10, %v793_v10, 0.0  ;;  %v743_v35 = vpop.xlane.xlu1 %742  ;;  %v782_v49 = vsub.f32 %v636_v59, %v749_v8 }
 0x31b   :  { %v819_v61 = vadd.f32 %v818_v60, %v817_v25  ;;  %v779_v18 = vsub.f32 %v633_v15, %v743_v35 }
 0x31c   :  { %v635_v43 = vadd.f32 %v617_v31, %v1669_v27  ;;  %v796_v34 = vsel %vm764_vm1, %v780_v26, 0.0  ;;  %v798_v27 = vsel %vm766_vm15, %v782_v49, 0.0 }
 0x31d   :  { %v1154_v4 = vpop.eup %1153  ;;  %v821_v37 = vadd.f32 %v820_v63, %v819_v61  ;;  %v795_v2 = vsel %vm763_vm9, %v779_v18, 0.0  ;;  %v824_v20 = vsel %vm800_vm10, %v796_v34, 0.0  ;;  %v828_v11 = vsel %vm800_vm10, %v798_v27, 0.0 }
 0x31e   :  { %v621_v51 = vmul.f32 0.6931472, %v1154_v4  ;;  %v822_v9 = vsel %vm800_vm10, %v795_v2, 0.0  ;;  %v747_v3 = vpop.xlane.xlu1 %746 }
 0x31f   :  { %v823_v39 = vadd.f32 %v822_v9, %v821_v37  ;;  %v781_v50 = vsub.f32 %v635_v43, %v747_v3 }
 0x320   :  { %v637_v46 = vadd.f32 %v621_v51, %v1648_v21 }
 0x321   :  { %v825_v44 = vadd.f32 %v824_v20, %v823_v39  ;;  %v797_v23 = vsel %vm765_vm13, %v781_v50, 0.0 }
 0x322   :  { %v826_v36 = vsel %vm800_vm10, %v797_v23, 0.0  ;;  %v751_v54 = vpop.xlane.xlu1 %750 }
 0x323   :  { %v827_v62 = vadd.f32 %v826_v36, %v825_v44  ;;  %v783_v7 = vsub.f32 %v637_v46, %v751_v54 }
 0x325   :  { %v799_v0 = vsel %vm767_vm5, %v783_v7, 0.0  ;;  %v829_v1 = vadd.f32 %v828_v11, %v827_v62 }
 0x326   :  { %v830_v21 = vsel %vm800_vm10, %v799_v0, 0.0  ;;  %v905_v52 = vpop.xlane.xlu1 %904  ;;  %vm913_vm10 = vcmp.eq.s32.totalorder %v1568_v57, 0 }
 0x327   :  { %v831_v45 = vadd.f32 %v830_v21, %v829_v1  ;;  %v906_v47 = vrot.slane %v905_v52, 4 }
 0x329   :  { %832 = vadd.xlane.f32.xlu0 %v831_v45  ;;  %v907_v29 = vadd.f32 %v906_v47, %v905_v52 }
 0x32b   :  { %v908_v38 = vrot.slane %v907_v29, 2 }
 0x32d   :  { %v909_v41 = vadd.f32 %v908_v38, %v907_v29 }
 0x32f   :  { %v910_v6 = vrot.slane %v909_v41, 1 }
 0x331   :  { %v911_v53 = vadd.f32 %v910_v6, %v909_v41 }
 0x3b6   :  { %v833_v40 = vpop.xlane.xlu0 %832 }
 0x3b7   :  { %v834_v16 = vrot.slane %v833_v40, 4 }
 0x3b9   :  { %v835_v32 = vadd.f32 %v834_v16, %v833_v40 }
 0x3bb   :  { %v836_v48 = vrot.slane %v835_v32, 2 }
 0x3bd   :  { %v837_v5 = vadd.f32 %v836_v48, %v835_v32 }
 0x3bf   :  { %v838_v14 = vrot.slane %v837_v5, 1 }
 0x3c1   :  { %v839_v56 = vadd.f32 %v838_v14, %v837_v5 }
 0x3c3   :  { %1076 = vpush %v839_v56 }
 0x3c4   :  { %1078 = vpush %v911_v53 }
 0x3f4   :  { %s1077_s5 = spop %1076 }
 0x3f5   :  { %v917_v33 = vstv %s1077_s5  ;;  %s1079_s8 = spop %1078 }
 0x3f6   :  { %v915_v17 = vstv %s1079_s8 }
 0x3f7   :  { %v916_v30 = vsel %vm914_vm8, %v915_v17, 0.0 }
 0x3f8   :  { %v918_v13 = vsel %vm913_vm10, %v917_v33, %v916_v30 }
 0x3f9   :  { %919 = vst [vmem:[#allocation2] sm:$0xff] %v918_v13 }
 0x3fa   :  { %1166 = shalt.err (!%p1163_p4)
}
 0x3fb   :  { %s1167_s12 = scalar_lea.hbm %s1861_s7, 128 }
 0x3fc   :  { %p1168_p5 = scmp.ne.s32.totalorder %s1861_s7, %s1167_s12  ;;  %p1171_p6 = scmp.lt.u32.totalorder %s1167_s12, %s1861_s7 }
 0x3fe   :  { %p1173_p7 = pnand %p1171_p6, %p1168_p5 }
 0x400   :  { %1176 = shalt.err (!%p1173_p7)
}
 0x401   :  { %931 = dma.vmem_to_hbm [thread:$0]  %s929_s30, 128, %s1861_s7, [#allocation3]  }
 0x402   :  { %1177 = dma.done.wait [#allocation3], 128  }
 0x403   :  { %1178 = vsyncadd [#allocation3], 4294967168 }
 0x404   :  { %937 = vsyncpa [#allocation3], 1 }

</bundles_post_ra>
